<compile_context>
chip_gen: v6e
topology: v6e:2x2x1
jax: 0.10.0
libtpu: 0.0.40
codegen_flags: <defaults>
</compile_context>

<pallas_src>
import functools

import jax
import jax.numpy as jnp
from jax.experimental import pallas as pl
from jax.experimental.pallas import tpu as pltpu

HIDDEN = 64  # Controller's fixed hidden width
_VMEM_BUDGET = 40 * 1024 * 1024  # v7x-safe working budget (64 MiB physical)


def _cdiv(a, b):
    return -(-a // b)


def _round_up(x, m):
    return (x + m - 1) // m * m


# ----------------------------------------------------------------------------
# Fused kernel: one row-block of the batch per grid step.
#   x_ref  : (TM, dim1)  streamed per step
#   w1_ref : (dim1, H)   VMEM-resident (constant index_map)
#   b1_ref : (1, H)      VMEM-resident
#   w2_ref : (1, H)      VMEM-resident (row layout -> lane-dense second layer)
#   out_ref: (1, TM)     lane-dense output block
# ----------------------------------------------------------------------------
def controller_kernel(x_ref, w1_ref, b1_ref, w2_ref, out_ref, *, compute_dtype):
    x = x_ref[...].astype(compute_dtype)
    w1 = w1_ref[...].astype(compute_dtype)
    # (TM, dim1) @ (dim1, H) -> (TM, H); f32 accumulation on the MXU.
    z1 = jnp.dot(x, w1, preferred_element_type=jnp.float32)
    z1 = jnp.maximum(z1 + b1_ref[...], 0.0)                       # bias + ReLU
    # Second layer, lane-dense: (1, H) . (TM, H) contracting H -> (1, TM).
    logit = jax.lax.dot_general(
        w2_ref[...], z1, (((1,), (1,)), ((), ())),
        preferred_element_type=jnp.float32)
    out_ref[...] = 1.0 / (1.0 + jnp.exp(-logit))                  # sigmoid (exp -> EUP)


def _choose_tm(B, dim1, H, block_rows):
    """Row tile: big enough to amortize per-step overhead (~0.35us), small
    enough to (a) fit the v7x VMEM budget and (b) keep >= 2 row blocks so the
    megacore 'parallel' axis has work for both TensorCores."""
    if B <= 128:
        return B  # single full-array block (always layout-legal)
    weights = 4 * 2 * (dim1 * H + 2 * H)                  # conservative: 2 buffers
    tm_vmem = max(128, (_VMEM_BUDGET - weights) // (2 * 4 * dim1))
    tm_par = _round_up(_cdiv(B, 2), 128)                  # keep grid >= 2 blocks
    tm = min(block_rows, tm_vmem, tm_par)
    return max(128, (tm // 128) * 128)                    # lane-dense out needs %128


def prepare_controller_params(w1, b1, w2):
    """One-time re-layout of the torch nn.Linear parameters (hoisted out of
    the per-call hot path): W1 -> (dim1, H), b1 -> (1, H), W2 -> (1, H)."""
    H, dim1 = w1.shape
    w1_t = jnp.asarray(w1, jnp.float32).T                 # (dim1, H) right-multiply
    b1_r = jnp.asarray(b1, jnp.float32).reshape(1, H)     # (1, H)
    w2_r = jnp.asarray(w2, jnp.float32).reshape(1, H)     # (1, H) row
    return w1_t, b1_r, w2_r


@functools.partial(jax.jit, static_argnames=("block_rows", "compute_dtype"))
def controller_forward(x, w1_t, b1_r, w2_r, *, block_rows=1024,
                       compute_dtype=jnp.float32):
    """Pallas equivalent of Controller.forward: sigmoid(relu(x@W1+b1)@W2) -> (B,1)."""
    B, dim1 = x.shape
    H = w1_t.shape[1]

    tm = _choose_tm(B, dim1, H, block_rows)
    grid = (_cdiv(B, tm),)   # ragged last block handled by Pallas masking (no pad)

    # VMEM actually needed (double-buffered x block + resident weights + out).
    vmem_need = 4 * (2 * tm * dim1 + 2 * (dim1 * H + 2 * H) + 2 * tm) + (1 << 20)
    vmem_limit = min(max(vmem_need, 32 * 1024 * 1024), 48 * 1024 * 1024)

    flops = 2 * B * dim1 * H + 2 * B * H
    bytes_accessed = 4 * (B * dim1 + dim1 * H + 2 * H + B)

    out = pl.pallas_call(
        functools.partial(controller_kernel, compute_dtype=compute_dtype),
        grid=grid,
        in_specs=[
            pl.BlockSpec((tm, dim1), lambda i: (i, 0)),   # x: streamed row blocks
            pl.BlockSpec((dim1, H), lambda i: (0, 0)),    # W1: VMEM-resident
            pl.BlockSpec((1, H),    lambda i: (0, 0)),    # b1: VMEM-resident
            pl.BlockSpec((1, H),    lambda i: (0, 0)),    # W2 row: VMEM-resident
        ],
        out_specs=pl.BlockSpec((1, tm), lambda i: (0, i)),  # lane-dense output
        out_shape=jax.ShapeDtypeStruct((1, B), jnp.float32),
        compiler_params=pltpu.CompilerParams(
            dimension_semantics=("parallel",),            # megacore on v7x
            vmem_limit_bytes=vmem_limit),
        cost_estimate=pl.CostEstimate(
            flops=flops, transcendentals=B, bytes_accessed=bytes_accessed),
    )(x, w1_t, b1_r, w2_r)

    return out.reshape(B, 1)


# ----------------------------------------------------------------------------
# Parameter init matching the PyTorch module, and a pure-JAX reference.
# ----------------------------------------------------------------------------
def kaiming_normal(key, shape):
    # torch.nn.init.kaiming_normal_ defaults: fan_in mode, a=0 -> gain=sqrt(2)
    fan_in = shape[1]
    std = (2.0 / fan_in) ** 0.5
    return std * jax.random.normal(key, shape, jnp.float32)


def init_controller_params(key, dim1):
    k1, kb, k2 = jax.random.split(key, 3)
    w1 = kaiming_normal(k1, (HIDDEN, dim1))
    bound = 1.0 / (dim1 ** 0.5)  # torch nn.Linear default bias init
    b1 = jax.random.uniform(kb, (HIDDEN,), jnp.float32, -bound, bound)
    w2 = kaiming_normal(k2, (1, HIDDEN))
    return w1, b1, w2


def controller_ref(x, w1, b1, w2):
    z1 = jnp.maximum(x @ w1.T + b1, 0.0)
    return 1.0 / (1.0 + jnp.exp(-(z1 @ w2.T)))


if __name__ == "__main__":
    key = jax.random.PRNGKey(0)
    k_param, k_x1, k_x2 = jax.random.split(key, 3)

    dim1 = 32
    w1, b1, w2 = init_controller_params(k_param, dim1)
    params = prepare_controller_params(w1, b1, w2)

    # Case 1: tiny batch -> single full-array block.
    x_small = jax.random.normal(k_x1, (8, dim1), jnp.float32)
    out_small = jax.block_until_ready(controller_forward(x_small, *params))
    ref_small = controller_ref(x_small, w1, b1, w2)
    assert out_small.shape == (8, 1)
    assert jnp.allclose(out_small, ref_small, atol=1e-5, rtol=1e-5)

    # Case 2: larger ragged batch -> 2 row blocks (megacore-parallel axis),
    # ragged last block masked by Pallas, lane-dense (1, B) output, no pad.
    x_big = jax.random.normal(k_x2, (1000, dim1), jnp.float32)
    out_big = jax.block_until_ready(controller_forward(x_big, *params))
    ref_big = controller_ref(x_big, w1, b1, w2)
    assert out_big.shape == (1000, 1)
    assert jnp.allclose(out_big, ref_big, atol=1e-5, rtol=1e-5)

    # Case 3: bf16 fast path for the first matmul (v5e / v7x MXU relief),
    # f32 accumulation; tolerance loosened by construction.
    out_bf16 = jax.block_until_ready(
        controller_forward(x_big, *params, compute_dtype=jnp.bfloat16))
    assert out_bf16.shape == (1000, 1)
    assert jnp.allclose(out_bf16, ref_big, atol=2.5e-2, rtol=0.0)

    print("KERNEL_OK")
</pallas_src>

<mosaic_0001>
module attributes {stable_mosaic.version = 11 : i64} {
  func.func @controller_kernel(%arg0: i32, %arg1: memref<8x32xf32, #tpu.memory_space<vmem>>, %arg2: memref<32x64xf32, #tpu.memory_space<vmem>>, %arg3: memref<1x64xf32, #tpu.memory_space<vmem>>, %arg4: memref<1x64xf32, #tpu.memory_space<vmem>>, %arg5: memref<1x8xf32, #tpu.memory_space<vmem>>) attributes {dimension_semantics = [#tpu.dimension_semantics<parallel>], iteration_bounds = array<i64: 1>, scalar_prefetch = 0 : i64, scratch_operands = 0 : i64, tpu.core_type = #tpu.core_type<tc>, window_params = [{transform_indices = @transform_0, window_bounds = array<i64: 8, 32>}, {pipeline_mode = #tpu.pipeline_mode<synchronous>, transform_indices = @transform_1, window_bounds = array<i64: 32, 64>}, {pipeline_mode = #tpu.pipeline_mode<synchronous>, transform_indices = @transform_2, window_bounds = array<i64: 1, 64>}, {pipeline_mode = #tpu.pipeline_mode<synchronous>, transform_indices = @transform_3, window_bounds = array<i64: 1, 64>}, {transform_indices = @transform_4, window_bounds = array<i64: 1, 8>}]} {
    %c0 = arith.constant 0 : index
    %c0_0 = arith.constant 0 : index
    %0 = vector.load %arg1[%c0, %c0_0] : memref<8x32xf32, #tpu.memory_space<vmem>>, vector<8x32xf32>
    %c0_1 = arith.constant 0 : index
    %c0_2 = arith.constant 0 : index
    %1 = vector.load %arg2[%c0_1, %c0_2] : memref<32x64xf32, #tpu.memory_space<vmem>>, vector<32x64xf32>
    %cst = arith.constant dense<0.000000e+00> : vector<8x64xf32>
    %2 = tpu.matmul %0, %1, %cst {dimension_numbers = #tpu.dot_dimension_numbers<[1], [0], [0], [1], [0, 0, 1, 1], [], []>} : vector<8x32xf32>, vector<32x64xf32>, vector<8x64xf32> -> vector<8x64xf32>
    %c0_3 = arith.constant 0 : index
    %c0_4 = arith.constant 0 : index
    %3 = vector.load %arg3[%c0_3, %c0_4] : memref<1x64xf32, #tpu.memory_space<vmem>>, vector<1x64xf32>
    %4 = vector.broadcast %3 : vector<1x64xf32> to vector<8x64xf32>
    %5 = arith.addf %2, %4 : vector<8x64xf32>
    %cst_5 = arith.constant 0.000000e+00 : f32
    %6 = vector.broadcast %cst_5 : f32 to vector<8x64xf32>
    %7 = arith.maximumf %5, %6 : vector<8x64xf32>
    %c0_6 = arith.constant 0 : index
    %c0_7 = arith.constant 0 : index
    %8 = vector.load %arg4[%c0_6, %c0_7] : memref<1x64xf32, #tpu.memory_space<vmem>>, vector<1x64xf32>
    %cst_8 = arith.constant dense<0.000000e+00> : vector<1x8xf32>
    %9 = tpu.matmul %8, %7, %cst_8 {dimension_numbers = #tpu.dot_dimension_numbers<[1], [1], [0], [0], [0, 0, 1, 0], [], []>} : vector<1x64xf32>, vector<8x64xf32>, vector<1x8xf32> -> vector<1x8xf32>
    %cst_9 = arith.constant 0.000000e+00 : f32
    %10 = vector.broadcast %cst_9 : f32 to vector<1x8xf32>
    %11 = arith.subf %10, %9 : vector<1x8xf32>
    %12 = math.exp %11 : vector<1x8xf32>
    %cst_10 = arith.constant 1.000000e+00 : f32
    %13 = vector.broadcast %cst_10 : f32 to vector<1x8xf32>
    %14 = arith.addf %13, %12 : vector<1x8xf32>
    %cst_11 = arith.constant 1.000000e+00 : f32
    %15 = vector.broadcast %cst_11 : f32 to vector<1x8xf32>
    %16 = arith.divf %15, %14 : vector<1x8xf32>
    %c0_12 = arith.constant 0 : index
    %c0_13 = arith.constant 0 : index
    %17 = vector.load %arg5[%c0_12, %c0_13] : memref<1x8xf32, #tpu.memory_space<vmem>>, vector<1x8xf32>
    tpu.vector_store %arg5[%c0_12, %c0_13], %16 {strides = array<i32>} : memref<1x8xf32, #tpu.memory_space<vmem>>, vector<1x8xf32>,
    return
  }
  func.func @transform_0(%arg0: i32) -> (i32, i32) {
    %c0_i32 = arith.constant 0 : i32
    %c0_i32_0 = arith.constant 0 : i32
    return %arg0, %c0_i32 : i32, i32
  }
  func.func @transform_1(%arg0: i32) -> (i32, i32) {
    %c0_i32 = arith.constant 0 : i32
    %c0_i32_0 = arith.constant 0 : i32
    %c0_i32_1 = arith.constant 0 : i32
    return %c0_i32, %c0_i32_0 : i32, i32
  }
  func.func @transform_2(%arg0: i32) -> (i32, i32) {
    %c0_i32 = arith.constant 0 : i32
    %c0_i32_0 = arith.constant 0 : i32
    %c0_i32_1 = arith.constant 0 : i32
    return %c0_i32, %c0_i32_0 : i32, i32
  }
  func.func @transform_3(%arg0: i32) -> (i32, i32) {
    %c0_i32 = arith.constant 0 : i32
    %c0_i32_0 = arith.constant 0 : i32
    %c0_i32_1 = arith.constant 0 : i32
    return %c0_i32, %c0_i32_0 : i32, i32
  }
  func.func @transform_4(%arg0: i32) -> (i32, i32) {
    %c0_i32 = arith.constant 0 : i32
    %c0_i32_0 = arith.constant 0 : i32
    return %c0_i32, %arg0 : i32, i32
  }
}

</mosaic_0001>

<bundles_post_ra>
// kernel: controller_forward.1
= control target key start
LH: loop header
LB: loop body
LE: loop exit
PB: predicated region body
PF: predicated region fallthrough
CT: control target
= control target key end

     0   :  { %9 = vsyncpa [#allocation3], 0  ;;  %s384_s0 = inlined_call_operand.hbm [shape: f32[8,32], index: 0, kind: input, shape index: {}]   ;;  %s385_s1 = inlined_call_operand.hbm [shape: f32[32,64], index: 1, kind: input, shape index: {}]   ;;  %s386_s2 = inlined_call_operand.vmem [shape: f32[1,64], index: 2, kind: input, shape index: {}]   ;;  %s387_s3 = inlined_call_operand.vmem [shape: f32[1,64], index: 3, kind: input, shape index: {}]   ;;  %s388_s4 = inlined_call_operand.hbm [shape: f32[1,8], index: 4, kind: output, shape index: {}]  }
   0x1   :  { %10 = vsyncpa [#allocation6], 0 }
   0x2   :  { %11 = vsyncpa [#allocation4], 0  ;;  %s337_s15 = smov [#allocation2]   ;;  %s338_s17 = smov [#allocation5]  }
   0x3   :  { %s18_s16 = sshll.u32 %s337_s15, 4  ;;  %s27_s18 = sshll.u32 %s338_s17, 4  ;;  %s19_s16 = int_to_ptr.vmem [resolvable:$true] %s18_s16  ;;  %s28_s18 = int_to_ptr.vmem [resolvable:$true] %s27_s18 }
   0x4   :  { %s279_s19 = scalar_lea.vmem %s19_s16, 128  ;;  %p284_p1 = scmp.lt.s32.totalorder %s19_s16, %s19_s16 }
   0x5   :  { %p280_p0 = scmp.ne.s32.totalorder %s19_s16, %s279_s19  ;;  %p285_p2 = scmp.lt.s32.totalorder %s279_s19, %s279_s19 }
   0x7   :  { %p286_p3 = por %p285_p2, %p284_p1 }
   0x9   :  { %p287_p4 = pnand %p286_p3, %p280_p0 }
   0xb   :  { %290 = shalt.err (!%p287_p4)
}
   0xc   :  { %21 = dma.hbm_to_vmem [thread:$0]  %s384_s0, 128, %s19_s16, [#allocation3]  }
   0xd   :  { %s299_s22 = scalar_lea.vmem %s28_s18, 512  ;;  %p304_p6 = scmp.lt.s32.totalorder %s28_s18, %s28_s18 }
   0xe   :  { %p300_p5 = scmp.ne.s32.totalorder %s28_s18, %s299_s22  ;;  %p305_p7 = scmp.lt.s32.totalorder %s299_s22, %s299_s22 }
  0x10   :  { %p306_p8 = por %p305_p7, %p304_p6 }
  0x12   :  { %p307_p9 = pnand %p306_p8, %p300_p5 }
  0x14   :  { %310 = shalt.err (!%p307_p9)
}
  0x15   :  { %s339_s23 = smov 128   ;;  %s340_s24 = smov 8  }
  0x16   :  { %33 = dma.hbm_to_vmem [thread:$0]  %s385_s1, 512, %s28_s18, [#allocation6], %s339_s23, %s339_s23, %s340_s24  }
  0x17   :  { %331 = dma.done.wait [#allocation3], 128  }
  0x18   :  { %332 = vsyncadd [#allocation3], 4294967168 }
  0x19   :  { %333 = dma.done.wait [#allocation6], 512  }
  0x1a   :  { %334 = vsyncadd [#allocation6], 4294966784  ;;  %v341_v0 = vmov 0.0   ;;  %vm342_vm0 = vmmov 0   ;;  %v48_v1 = vld [vmem:[#allocation5 + $0x18] sm:$0xff]  ;;  %v47_v2 = vld [vmem:[#allocation5 + $0x10] sm:$0xff] }
  0x1b   :  { %244 = vmatprep.subr.mxu0 %v341_v0  ;;  %252 = vmatprep.mubr.msk.f32.mxu0 %vm342_vm0, %v341_v0  ;;  %v46_v3 = vld [vmem:[#allocation5 + $0x8] sm:$0xff]  ;;  %v45_v4 = vld [vmem:[#allocation5] sm:$0xff]  ;;  %v44_v5 = vld [vmem:[#allocation2] sm:$0xff]  ;;  %vm56_vm1 = vcmask 261120   ;;  %vm132_vm2 = vcmask 523264   ;;  %vm215_vm3 = vcmask 57344  }
  0x1c   :  { %255 = vmatprep.subr.mxu1 %v341_v0  ;;  %257 = vmatprep.mubr.msk.f32.mxu1 %vm342_vm0, %v341_v0  ;;  %v233_v6 = vld [vmem:[%s386_s2] ss:$0 sm:$0xff]  ;;  %s343_s2 = smov [#allocation7]  }
  0x1d   :  { %245 = vmatpush3.msra.mxu0 %v48_v1  ;;  %v131_v11 = vld [vmem:[%s387_s3] sm:$0x1]  ;;  %s223_s29 = sshll.u32 %s343_s2, 4  ;;  %s224_s29 = int_to_ptr.vmem [resolvable:$true] %s223_s29 }
  0x1e   :  { %246 = vmatprep.subr.mxu0 %v341_v0  ;;  %s311_s30 = scalar_lea.vmem %s224_s29, 16  ;;  %s315_s5 = scalar_lea.vmem %s224_s29, 32 }
  0x1f   :  { %247 = vmatpush3.msra.mxu0 %v47_v2  ;;  %p312_p10 = scmp.ne.s32.totalorder %s224_s29, %s311_s30  ;;  %p316_p11 = scmp.lt.s32.totalorder %s224_s29, %s224_s29 }
  0x20   :  { %248 = vmatprep.subr.mxu0 %v341_v0  ;;  %p317_p12 = scmp.lt.s32.totalorder %s315_s5, %s311_s30 }
  0x21   :  { %249 = vmatpush3.msra.mxu0 %v46_v3 }
  0x22   :  { %250 = vmatprep.subr.mxu0 %v341_v0  ;;  %p318_p13 = por %p317_p12, %p316_p11 }
  0x23   :  { %251 = vmatpush3.msra.mxu0 %v45_v4 }
  0x24   :  { %253 = vmatmul.mubr.msk.f32.vlgmr.msra.gmra.mxu0 %vm56_vm1, %v44_v5  ;;  %p319_p0 = pnand %p318_p13, %p312_p10 }
  0xe4   :  { %v126_v7 = vpop.f32.mrf.mxu0 }
  0xe5   :  { %v127_v8 = vadd.f32 %v233_v6, %v126_v7 }
  0xe6   :  { %v254_v9 = vpop.f32.mrf.mxu0 }
  0xe7   :  { %v130_v10 = vmax.f32 %v127_v8, 0.0 }
  0xe9   :  { %256 = vmatpush3.xpose.msk.msra.mxu1 %vm132_vm2, %v130_v10 }
  0xec   :  { %258 = vmatmul.mubr.msk.f32.vlgmr.msra.gmra.mxu1 %vm132_vm2, %v131_v11 }
 0x1ac   :  { %v205_v12 = vpop.f32.mrf.mxu1 }
 0x1ad   :  { %v209_v13 = vsub.f32 0.0, %v205_v12 }
 0x1ae   :  { %v259_v14 = vpop.f32.mrf.mxu1 }
 0x1af   :  { %v210_v15 = vmul.f32 1.442695, %v209_v13 }
 0x1b1   :  { %267 = vpow2.f32 %v210_v15 }
 0x1be   :  { %v268_v16 = vpop.eup %267 }
 0x1bf   :  { %v212_v17 = vadd.f32 1.0, %v268_v16 }
 0x1c1   :  { %269 = vrcp.f32 %v212_v17 }
 0x1ce   :  { %v270_v18 = vpop.eup %269 }
 0x1cf   :  { %216 = vst.msk [vmem:[#allocation7] sm:$0x1] %vm215_vm3, %v270_v18 }
 0x1d0   :  { %322 = shalt.err (!%p319_p0)
}
 0x1d1   :  { %226 = dma.vmem_to_hbm [thread:$0]  %s224_s29, 16, %s388_s4, [#allocation4]  }
 0x1d2   :  { %335 = dma.done.wait [#allocation4], 16  }
 0x1d3   :  { %336 = vsyncadd [#allocation4], 4294967280 }
 0x1d4   :  { %230 = vsyncpa [#allocation3], 1 }
 0x1d5   :  { %231 = vsyncpa [#allocation6], 1 }
 0x1d6   :  { %232 = vsyncpa [#allocation4], 1 }

</bundles_post_ra>
